<compile_context>
chip_gen: v5e
topology: v5e:2x2
jax: 0.10.0
libtpu: 0.0.40
codegen_flags: <defaults>
</compile_context>

<pallas_src>
import math
import functools

import jax
import jax.numpy as jnp
from jax import lax
from jax.experimental import pallas as pl
from jax.experimental.pallas import tpu as pltpu


def _layer_norm(x, gamma, beta, eps=1e-6):
    # single pass: mean and mean-of-squares, var = E[x^2] - E[x]^2
    mu = jnp.mean(x, axis=-1, keepdims=True)
    ms = jnp.mean(x * x, axis=-1, keepdims=True)
    var = ms - mu * mu
    return (x - mu) * lax.rsqrt(var + eps) * gamma + beta


# ----------------------------------------------------------------------------
# Pallas kernel: one grid step == one batch element; the whole layer
# (LN -> fused QKV+RoPE-swizzle proj -> RoPE -> attention(+out-proj) ->
#  residual -> FFN) runs on-chip on (L, D) tiles.
# ----------------------------------------------------------------------------
def sa_layer_kernel(H, Dh,
                    x_ref, m_ref,
                    wp_ref, bp_ref,            # fused projection (D, 5D), (1, 5D)
                    wo_ref, bo_ref,
                    g1_ref, be1_ref, g2_ref, be2_ref,
                    w1_ref, bf1_ref, w2_ref, bf2_ref,
                    cos_ref, sin_ref,
                    o_ref):
    D = H * Dh
    x = x_ref[0]                      # (L, D)  original inputs (for residual)
    L = x.shape[0]

    # --- pre-attention LayerNorm ---
    xn = _layer_norm(x, g1_ref[...], be1_ref[...])

    # --- fused projection: [q, q_swz, k, k_swz, v] in ONE MXU matmul ---
    # (query scale and the RoPE pair-swap matrix are folded into wp/bp on host)
    proj = jnp.dot(xn, wp_ref[...], preferred_element_type=jnp.float32) + bp_ref[...]

    cos_full = cos_ref[...]           # (L, D) per-head cos table tiled over heads
    sin_full = sin_ref[...]           # (L, D)

    # RoPE applied once on full (L, D): 2 multiplies + 1 add per tensor (VPU).
    q = proj[:, 0 * D:1 * D] * cos_full + proj[:, 1 * D:2 * D] * sin_full
    k = proj[:, 2 * D:3 * D] * cos_full + proj[:, 3 * D:4 * D] * sin_full
    v = proj[:, 4 * D:5 * D]

    mask_bool = m_ref[0] > 0.0        # (1, L) — compare hoisted out of the loop

    # --- per-head attention with the output projection fused in ---
    attn_out = jnp.zeros((L, D), jnp.float32)
    for h in range(H):                # static unroll over heads
        lo = h * Dh
        qh = q[:, lo:lo + Dh]
        kh = k[:, lo:lo + Dh]
        vh = v[:, lo:lo + Dh]

        # q @ k^T without materializing a transpose
        s = lax.dot_general(qh, kh, (((1,), (1,)), ((), ())),
                            preferred_element_type=jnp.float32)      # (L, L)
        s = jnp.where(mask_bool, -1e18, s)                           # masked_fill
        s_max = jnp.max(s, axis=-1, keepdims=True)
        p = jnp.exp(s - s_max)
        denom = jnp.sum(p, axis=-1, keepdims=True)
        ctx_h = jnp.dot(p, vh, preferred_element_type=jnp.float32)   # (L, Dh)
        # normalize after attn@V (smaller tile) using the EUP reciprocal
        ctx_h = ctx_h * pl.reciprocal(denom, approx=True)
        # fused output projection slice: no (L, D) ctx scratch round trip
        attn_out = attn_out + jnp.dot(ctx_h, wo_ref[lo:lo + Dh, :],
                                      preferred_element_type=jnp.float32)

    # --- output bias + residual (dropout == identity) ---
    out1 = attn_out + bo_ref[...] + x

    # --- PositionwiseFeedForward: LN -> Linear -> ReLU -> Linear -> residual ---
    yn = _layer_norm(out1, g2_ref[...], be2_ref[...])
    inter = jnp.maximum(
        jnp.dot(yn, w1_ref[...], preferred_element_type=jnp.float32) + bf1_ref[...], 0.0)
    ff = jnp.dot(inter, w2_ref[...], preferred_element_type=jnp.float32) + bf2_ref[...]
    o_ref[0] = ff + out1


# ----------------------------------------------------------------------------
# Host-side glue: RoPE tables, swizzle folding, fused weights, pallas_call.
# ----------------------------------------------------------------------------
def _rope_tables(L, Dh):
    # reproduces sinusoidal_position_embedding + even/odd gather exactly
    pos = jnp.arange(L, dtype=jnp.float32)[:, None]                    # (L, 1)
    ids = jnp.arange(Dh // 2, dtype=jnp.float32)
    theta = jnp.power(10000.0, -2.0 * ids / Dh)
    emb = pos * theta                                                  # (L, Dh/2)
    pe = jnp.stack([jnp.sin(emb), jnp.cos(emb)], axis=1).reshape(L, Dh)
    cos_pos = jnp.repeat(pe[:, 1::2], 2, axis=-1)                      # (L, Dh)
    sin_pos = jnp.repeat(pe[:, 0::2], 2, axis=-1)                      # (L, Dh)
    return cos_pos, sin_pos


def _swizzle_matrix(D):
    # q2 = q @ R  with  q2[2j] = -q[2j+1], q2[2j+1] = q[2j]
    # (pairs never cross head boundaries since Dh is even)
    R = jnp.zeros((D, D), jnp.float32)
    even = jnp.arange(0, D, 2)
    R = R.at[even + 1, even].set(-1.0)
    R = R.at[even, even + 1].set(1.0)
    return R


def sa_layer_xl(x, mask, distances, params, heads):
    del distances  # unused in the rel_pos='rope' branch (matches PyTorch code)
    B, L, D = x.shape
    Dh = D // heads
    scale = 1.0 / math.sqrt(Dh)

    cos_h, sin_h = _rope_tables(L, Dh)              # (L, Dh)
    cos_full = jnp.tile(cos_h, (1, heads))          # (L, D)
    sin_full = jnp.tile(sin_h, (1, heads))          # (L, D)
    R = _swizzle_matrix(D)

    # Fold query scale + RoPE swizzle into one fused projection weight (D, 5D):
    # columns = [q, q@R, k, k@R, v]
    wq_s = params["wq"] * scale
    bq_s = params["bq"] * scale
    w_proj = jnp.concatenate(
        [wq_s, wq_s @ R, params["wk"], params["wk"] @ R, params["wv"]], axis=1)
    b_proj = jnp.concatenate(
        [bq_s, bq_s @ R, params["bk"], params["bk"] @ R, params["bv"]], axis=1)

    weight_inputs = [
        w_proj, b_proj,
        params["wo"], params["bo"],
        params["g1"], params["be1"], params["g2"], params["be2"],
        params["w1"], params["bf1"], params["w2"], params["bf2"],
        cos_full, sin_full,
    ]

    def full2(arr):
        # constant index_map across the batch grid -> no re-fetch per step
        return pl.BlockSpec(arr.shape, lambda b: (0, 0))

    in_specs = (
        [pl.BlockSpec((1, L, D), lambda b: (b, 0, 0)),
         pl.BlockSpec((1, 1, L), lambda b: (b, 0, 0))]
        + [full2(w) for w in weight_inputs]
    )

    kernel = functools.partial(sa_layer_kernel, heads, Dh)

    return pl.pallas_call(
        kernel,
        out_shape=jax.ShapeDtypeStruct((B, L, D), jnp.float32),
        grid=(B,),
        in_specs=in_specs,
        out_specs=pl.BlockSpec((1, L, D), lambda b: (b, 0, 0)),
        compiler_params=pltpu.CompilerParams(
            dimension_semantics=("parallel",)),   # batch steps are independent
    )(x, mask, *weight_inputs)


# ----------------------------------------------------------------------------
# Pure-JAX reference (mirrors the PyTorch forward op-for-op) for validation.
# ----------------------------------------------------------------------------
def reference(x, mask, distances, params, heads):
    del distances
    B, L, D = x.shape
    Dh = D // heads

    def ln(t, g, b, eps=1e-6):
        mu = jnp.mean(t, axis=-1, keepdims=True)
        var = jnp.mean((t - mu) ** 2, axis=-1, keepdims=True)
        return (t - mu) * lax.rsqrt(var + eps) * g + b

    xn = ln(x, params["g1"], params["be1"])
    q = xn @ params["wq"] + params["bq"]
    k = xn @ params["wk"] + params["bk"]
    v = xn @ params["wv"] + params["bv"]

    def shape(t):
        return t.reshape(B, L, heads, Dh).transpose(0, 2, 1, 3)

    q = shape(q) / math.sqrt(Dh)
    k = shape(k)
    v = shape(v)

    cos_pos, sin_pos = _rope_tables(L, Dh)

    def rope(t):
        t2 = jnp.stack([-t[..., 1::2], t[..., ::2]], axis=-1).reshape(t.shape)
        return t * cos_pos + t2 * sin_pos

    q = rope(q)
    k = rope(k)

    scores = jnp.einsum("bhqd,bhkd->bhqk", q, k)
    scores = jnp.where(mask[:, None, :, :] > 0.0, -1e18, scores)
    attn = jax.nn.softmax(scores, axis=-1)
    ctx = jnp.einsum("bhqk,bhkd->bhqd", attn, v)
    ctx = ctx.transpose(0, 2, 1, 3).reshape(B, L, D)
    out1 = ctx @ params["wo"] + params["bo"] + x

    yn = ln(out1, params["g2"], params["be2"])
    inter = jax.nn.relu(yn @ params["w1"] + params["bf1"])
    ff = inter @ params["w2"] + params["bf2"]
    return ff + out1


if __name__ == "__main__":
    B, L, D, H, DFF = 2, 8, 32, 4, 64

    key = jax.random.PRNGKey(0)
    ks = jax.random.split(key, 20)

    def w(k, shape, scale=0.05):
        return jax.random.normal(k, shape, jnp.float32) * scale

    params = dict(
        wq=w(ks[0], (D, D)),  bq=w(ks[1], (1, D)),
        wk=w(ks[2], (D, D)),  bk=w(ks[3], (1, D)),
        wv=w(ks[4], (D, D)),  bv=w(ks[5], (1, D)),
        wo=w(ks[6], (D, D)),  bo=w(ks[7], (1, D)),
        g1=jnp.ones((1, D), jnp.float32),  be1=jnp.zeros((1, D), jnp.float32),
        g2=jnp.ones((1, D), jnp.float32),  be2=jnp.zeros((1, D), jnp.float32),
        w1=w(ks[8], (D, DFF)),  bf1=w(ks[9], (1, DFF)),
        w2=w(ks[10], (DFF, D)), bf2=w(ks[11], (1, D)),
    )

    x = jax.random.normal(ks[12], (B, L, D), jnp.float32)
    # mask: 1.0 at padded key positions (batch 0: none, batch 1: last 3 keys)
    valid = jnp.array([L, L - 3])
    mask = (jnp.arange(L)[None, :] >= valid[:, None]).astype(jnp.float32)[:, None, :]
    # distances are unused in the rope branch; kept for interface fidelity
    distances = jnp.zeros((B, L, L), jnp.int32)

    out = sa_layer_xl(x, mask, distances, params, H)
    out = jax.block_until_ready(out)

    ref = reference(x, mask, distances, params, H)
    assert out.shape == (B, L, D)
    # tolerance slightly relaxed vs f32-exact because the softmax denominator
    # uses the EUP approximate reciprocal (pl.reciprocal(approx=True)).
    assert jnp.allclose(out, ref, atol=5e-3, rtol=5e-3), float(jnp.max(jnp.abs(out - ref)))

    print("KERNEL_OK")
</pallas_src>

<mosaic_0001>
module attributes {stable_mosaic.version = 11 : i64} {
  func.func @sa_layer_kernel(%arg0: i32, %arg1: memref<1x8x32xf32, #tpu.memory_space<vmem>>, %arg2: memref<1x1x8xf32, #tpu.memory_space<vmem>>, %arg3: memref<32x160xf32, #tpu.memory_space<vmem>>, %arg4: memref<1x160xf32, #tpu.memory_space<vmem>>, %arg5: memref<32x32xf32, #tpu.memory_space<vmem>>, %arg6: memref<1x32xf32, #tpu.memory_space<vmem>>, %arg7: memref<1x32xf32, #tpu.memory_space<vmem>>, %arg8: memref<1x32xf32, #tpu.memory_space<vmem>>, %arg9: memref<1x32xf32, #tpu.memory_space<vmem>>, %arg10: memref<1x32xf32, #tpu.memory_space<vmem>>, %arg11: memref<32x64xf32, #tpu.memory_space<vmem>>, %arg12: memref<1x64xf32, #tpu.memory_space<vmem>>, %arg13: memref<64x32xf32, #tpu.memory_space<vmem>>, %arg14: memref<1x32xf32, #tpu.memory_space<vmem>>, %arg15: memref<8x32xf32, #tpu.memory_space<vmem>>, %arg16: memref<8x32xf32, #tpu.memory_space<vmem>>, %arg17: memref<1x8x32xf32, #tpu.memory_space<vmem>>) attributes {dimension_semantics = [#tpu.dimension_semantics<parallel>], iteration_bounds = array<i64: 2>, scalar_prefetch = 0 : i64, scratch_operands = 0 : i64, tpu.core_type = #tpu.core_type<tc>, window_params = [{transform_indices = @transform_0, window_bounds = array<i64: 1, 8, 32>}, {transform_indices = @transform_1, window_bounds = array<i64: 1, 1, 8>}, {pipeline_mode = #tpu.pipeline_mode<synchronous>, transform_indices = @transform_2, window_bounds = array<i64: 32, 160>}, {pipeline_mode = #tpu.pipeline_mode<synchronous>, transform_indices = @transform_3, window_bounds = array<i64: 1, 160>}, {pipeline_mode = #tpu.pipeline_mode<synchronous>, transform_indices = @transform_4, window_bounds = array<i64: 32, 32>}, {pipeline_mode = #tpu.pipeline_mode<synchronous>, transform_indices = @transform_5, window_bounds = array<i64: 1, 32>}, {pipeline_mode = #tpu.pipeline_mode<synchronous>, transform_indices = @transform_6, window_bounds = array<i64: 1, 32>}, {pipeline_mode = #tpu.pipeline_mode<synchronous>, transform_indices = @transform_7, window_bounds = array<i64: 1, 32>}, {pipeline_mode = #tpu.pipeline_mode<synchronous>, transform_indices = @transform_8, window_bounds = array<i64: 1, 32>}, {pipeline_mode = #tpu.pipeline_mode<synchronous>, transform_indices = @transform_9, window_bounds = array<i64: 1, 32>}, {pipeline_mode = #tpu.pipeline_mode<synchronous>, transform_indices = @transform_10, window_bounds = array<i64: 32, 64>}, {pipeline_mode = #tpu.pipeline_mode<synchronous>, transform_indices = @transform_11, window_bounds = array<i64: 1, 64>}, {pipeline_mode = #tpu.pipeline_mode<synchronous>, transform_indices = @transform_12, window_bounds = array<i64: 64, 32>}, {pipeline_mode = #tpu.pipeline_mode<synchronous>, transform_indices = @transform_13, window_bounds = array<i64: 1, 32>}, {pipeline_mode = #tpu.pipeline_mode<synchronous>, transform_indices = @transform_14, window_bounds = array<i64: 8, 32>}, {pipeline_mode = #tpu.pipeline_mode<synchronous>, transform_indices = @transform_15, window_bounds = array<i64: 8, 32>}, {transform_indices = @transform_16, window_bounds = array<i64: 1, 8, 32>}]} {
    %c0 = arith.constant 0 : index
    %c0_0 = arith.constant 0 : index
    %c0_1 = arith.constant 0 : index
    %0 = vector.load %arg1[%c0, %c0_0, %c0_1] : memref<1x8x32xf32, #tpu.memory_space<vmem>>, vector<1x8x32xf32>
    %1 = vector.shape_cast %0 : vector<1x8x32xf32> to vector<8x32xf32>
    %c0_2 = arith.constant 0 : index
    %c0_3 = arith.constant 0 : index
    %2 = vector.load %arg7[%c0_2, %c0_3] : memref<1x32xf32, #tpu.memory_space<vmem>>, vector<1x32xf32>
    %c0_4 = arith.constant 0 : index
    %c0_5 = arith.constant 0 : index
    %3 = vector.load %arg8[%c0_4, %c0_5] : memref<1x32xf32, #tpu.memory_space<vmem>>, vector<1x32xf32>
    %cst = arith.constant dense<0.000000e+00> : vector<8xf32>
    %4 = vector.multi_reduction <add>, %1, %cst [1] : vector<8x32xf32> to vector<8xf32>
    %5 = vector.shape_cast %4 : vector<8xf32> to vector<8x1xf32>
    %cst_6 = arith.constant 3.200000e+01 : f32
    %6 = vector.broadcast %cst_6 : f32 to vector<8x1xf32>
    %7 = arith.divf %5, %6 : vector<8x1xf32>
    %8 = arith.mulf %1, %1 : vector<8x32xf32>
    %cst_7 = arith.constant dense<0.000000e+00> : vector<8xf32>
    %9 = vector.multi_reduction <add>, %8, %cst_7 [1] : vector<8x32xf32> to vector<8xf32>
    %10 = vector.shape_cast %9 : vector<8xf32> to vector<8x1xf32>
    %cst_8 = arith.constant 3.200000e+01 : f32
    %11 = vector.broadcast %cst_8 : f32 to vector<8x1xf32>
    %12 = arith.divf %10, %11 : vector<8x1xf32>
    %13 = arith.mulf %7, %7 : vector<8x1xf32>
    %14 = arith.subf %12, %13 : vector<8x1xf32>
    %15 = vector.broadcast %7 : vector<8x1xf32> to vector<8x32xf32>
    %16 = arith.subf %1, %15 : vector<8x32xf32>
    %cst_9 = arith.constant 9.99999997E-7 : f32
    %17 = vector.broadcast %cst_9 : f32 to vector<8x1xf32>
    %18 = arith.addf %14, %17 : vector<8x1xf32>
    %19 = math.rsqrt %18 : vector<8x1xf32>
    %20 = vector.broadcast %19 : vector<8x1xf32> to vector<8x32xf32>
    %21 = arith.mulf %16, %20 : vector<8x32xf32>
    %22 = vector.broadcast %2 : vector<1x32xf32> to vector<8x32xf32>
    %23 = arith.mulf %21, %22 : vector<8x32xf32>
    %24 = vector.broadcast %3 : vector<1x32xf32> to vector<8x32xf32>
    %25 = arith.addf %23, %24 : vector<8x32xf32>
    %c0_10 = arith.constant 0 : index
    %c0_11 = arith.constant 0 : index
    %26 = vector.load %arg3[%c0_10, %c0_11] : memref<32x160xf32, #tpu.memory_space<vmem>>, vector<32x160xf32>
    %cst_12 = arith.constant dense<0.000000e+00> : vector<8x160xf32>
    %27 = tpu.matmul %25, %26, %cst_12 {dimension_numbers = #tpu.dot_dimension_numbers<[1], [0], [0], [1], [0, 0, 1, 1], [], []>} : vector<8x32xf32>, vector<32x160xf32>, vector<8x160xf32> -> vector<8x160xf32>
    %c0_13 = arith.constant 0 : index
    %c0_14 = arith.constant 0 : index
    %28 = vector.load %arg4[%c0_13, %c0_14] : memref<1x160xf32, #tpu.memory_space<vmem>>, vector<1x160xf32>
    %29 = vector.broadcast %28 : vector<1x160xf32> to vector<8x160xf32>
    %30 = arith.addf %27, %29 : vector<8x160xf32>
    %c0_15 = arith.constant 0 : index
    %c0_16 = arith.constant 0 : index
    %31 = vector.load %arg15[%c0_15, %c0_16] : memref<8x32xf32, #tpu.memory_space<vmem>>, vector<8x32xf32>
    %c0_17 = arith.constant 0 : index
    %c0_18 = arith.constant 0 : index
    %32 = vector.load %arg16[%c0_17, %c0_18] : memref<8x32xf32, #tpu.memory_space<vmem>>, vector<8x32xf32>
    %33 = vector.extract_strided_slice %30 {offsets = [0, 0], sizes = [8, 32], strides = [1, 1]} : vector<8x160xf32> to vector<8x32xf32>
    %34 = arith.mulf %33, %31 : vector<8x32xf32>
    %35 = vector.extract_strided_slice %30 {offsets = [0, 32], sizes = [8, 32], strides = [1, 1]} : vector<8x160xf32> to vector<8x32xf32>
    %36 = arith.mulf %35, %32 : vector<8x32xf32>
    %37 = arith.addf %34, %36 : vector<8x32xf32>
    %38 = vector.extract_strided_slice %30 {offsets = [0, 64], sizes = [8, 32], strides = [1, 1]} : vector<8x160xf32> to vector<8x32xf32>
    %39 = arith.mulf %38, %31 : vector<8x32xf32>
    %40 = vector.extract_strided_slice %30 {offsets = [0, 96], sizes = [8, 32], strides = [1, 1]} : vector<8x160xf32> to vector<8x32xf32>
    %41 = arith.mulf %40, %32 : vector<8x32xf32>
    %42 = arith.addf %39, %41 : vector<8x32xf32>
    %43 = vector.extract_strided_slice %30 {offsets = [0, 128], sizes = [8, 32], strides = [1, 1]} : vector<8x160xf32> to vector<8x32xf32>
    %c0_19 = arith.constant 0 : index
    %c0_20 = arith.constant 0 : index
    %c0_21 = arith.constant 0 : index
    %44 = vector.load %arg2[%c0_19, %c0_20, %c0_21] : memref<1x1x8xf32, #tpu.memory_space<vmem>>, vector<1x1x8xf32>
    %45 = vector.shape_cast %44 : vector<1x1x8xf32> to vector<1x8xf32>
    %cst_22 = arith.constant 0.000000e+00 : f32
    %46 = vector.broadcast %cst_22 : f32 to vector<1x8xf32>
    %47 = arith.cmpf ogt, %45, %46 : vector<1x8xf32>
    %cst_23 = arith.constant 0.000000e+00 : f32
    %48 = vector.broadcast %cst_23 : f32 to vector<8x32xf32>
    %49 = vector.extract_strided_slice %37 {offsets = [0, 0], sizes = [8, 8], strides = [1, 1]} : vector<8x32xf32> to vector<8x8xf32>
    %50 = vector.extract_strided_slice %42 {offsets = [0, 0], sizes = [8, 8], strides = [1, 1]} : vector<8x32xf32> to vector<8x8xf32>
    %51 = vector.extract_strided_slice %43 {offsets = [0, 0], sizes = [8, 8], strides = [1, 1]} : vector<8x32xf32> to vector<8x8xf32>
    %cst_24 = arith.constant dense<0.000000e+00> : vector<8x8xf32>
    %52 = tpu.matmul %49, %50, %cst_24 {dimension_numbers = #tpu.dot_dimension_numbers<[1], [1], [0], [0], [0, 0, 1, 0], [], []>} : vector<8x8xf32>, vector<8x8xf32>, vector<8x8xf32> -> vector<8x8xf32>
    %cst_25 = arith.constant -9.99999984E+17 : f32
    %53 = vector.shape_cast %47 : vector<1x8xi1> to vector<1x8xi1>
    %54 = vector.broadcast %53 : vector<1x8xi1> to vector<8x8xi1>
    %55 = vector.broadcast %cst_25 : f32 to vector<8x8xf32>
    %56 = arith.select %54, %55, %52 : vector<8x8xi1>, vector<8x8xf32>
    %cst_26 = arith.constant dense<0xFF800000> : vector<8xf32>
    %57 = vector.multi_reduction <maximumf>, %56, %cst_26 [1] : vector<8x8xf32> to vector<8xf32>
    %58 = vector.shape_cast %57 : vector<8xf32> to vector<8x1xf32>
    %59 = vector.broadcast %58 : vector<8x1xf32> to vector<8x8xf32>
    %60 = arith.subf %56, %59 : vector<8x8xf32>
    %61 = math.exp %60 : vector<8x8xf32>
    %cst_27 = arith.constant dense<0.000000e+00> : vector<8xf32>
    %62 = vector.multi_reduction <add>, %61, %cst_27 [1] : vector<8x8xf32> to vector<8xf32>
    %63 = vector.shape_cast %62 : vector<8xf32> to vector<8x1xf32>
    %cst_28 = arith.constant dense<0.000000e+00> : vector<8x8xf32>
    %64 = tpu.matmul %61, %51, %cst_28 {dimension_numbers = #tpu.dot_dimension_numbers<[1], [0], [0], [1], [0, 0, 1, 1], [], []>} : vector<8x8xf32>, vector<8x8xf32>, vector<8x8xf32> -> vector<8x8xf32>
    %65 = tpu.reciprocal %63 {approx = true} : vector<8x1xf32> -> vector<8x1xf32>
    %66 = vector.broadcast %65 : vector<8x1xf32> to vector<8x8xf32>
    %67 = arith.mulf %64, %66 : vector<8x8xf32>
    %c0_29 = arith.constant 0 : index
    %c0_30 = arith.constant 0 : index
    %68 = vector.load %arg5[%c0_29, %c0_30] : memref<32x32xf32, #tpu.memory_space<vmem>>, vector<8x32xf32>
    %cst_31 = arith.constant dense<0.000000e+00> : vector<8x32xf32>
    %69 = tpu.matmul %67, %68, %cst_31 {dimension_numbers = #tpu.dot_dimension_numbers<[1], [0], [0], [1], [0, 0, 1, 1], [], []>} : vector<8x8xf32>, vector<8x32xf32>, vector<8x32xf32> -> vector<8x32xf32>
    %70 = arith.addf %48, %69 : vector<8x32xf32>
    %71 = vector.extract_strided_slice %37 {offsets = [0, 8], sizes = [8, 8], strides = [1, 1]} : vector<8x32xf32> to vector<8x8xf32>
    %72 = vector.extract_strided_slice %42 {offsets = [0, 8], sizes = [8, 8], strides = [1, 1]} : vector<8x32xf32> to vector<8x8xf32>
    %73 = vector.extract_strided_slice %43 {offsets = [0, 8], sizes = [8, 8], strides = [1, 1]} : vector<8x32xf32> to vector<8x8xf32>
    %cst_32 = arith.constant dense<0.000000e+00> : vector<8x8xf32>
    %74 = tpu.matmul %71, %72, %cst_32 {dimension_numbers = #tpu.dot_dimension_numbers<[1], [1], [0], [0], [0, 0, 1, 0], [], []>} : vector<8x8xf32>, vector<8x8xf32>, vector<8x8xf32> -> vector<8x8xf32>
    %cst_33 = arith.constant -9.99999984E+17 : f32
    %75 = vector.shape_cast %47 : vector<1x8xi1> to vector<1x8xi1>
    %76 = vector.broadcast %75 : vector<1x8xi1> to vector<8x8xi1>
    %77 = vector.broadcast %cst_33 : f32 to vector<8x8xf32>
    %78 = arith.select %76, %77, %74 : vector<8x8xi1>, vector<8x8xf32>
    %cst_34 = arith.constant dense<0xFF800000> : vector<8xf32>
    %79 = vector.multi_reduction <maximumf>, %78, %cst_34 [1] : vector<8x8xf32> to vector<8xf32>
    %80 = vector.shape_cast %79 : vector<8xf32> to vector<8x1xf32>
    %81 = vector.broadcast %80 : vector<8x1xf32> to vector<8x8xf32>
    %82 = arith.subf %78, %81 : vector<8x8xf32>
    %83 = math.exp %82 : vector<8x8xf32>
    %cst_35 = arith.constant dense<0.000000e+00> : vector<8xf32>
    %84 = vector.multi_reduction <add>, %83, %cst_35 [1] : vector<8x8xf32> to vector<8xf32>
    %85 = vector.shape_cast %84 : vector<8xf32> to vector<8x1xf32>
    %cst_36 = arith.constant dense<0.000000e+00> : vector<8x8xf32>
    %86 = tpu.matmul %83, %73, %cst_36 {dimension_numbers = #tpu.dot_dimension_numbers<[1], [0], [0], [1], [0, 0, 1, 1], [], []>} : vector<8x8xf32>, vector<8x8xf32>, vector<8x8xf32> -> vector<8x8xf32>
    %87 = tpu.reciprocal %85 {approx = true} : vector<8x1xf32> -> vector<8x1xf32>
    %88 = vector.broadcast %87 : vector<8x1xf32> to vector<8x8xf32>
    %89 = arith.mulf %86, %88 : vector<8x8xf32>
    %c8 = arith.constant 8 : index
    %c0_37 = arith.constant 0 : index
    %90 = vector.load %arg5[%c8, %c0_37] : memref<32x32xf32, #tpu.memory_space<vmem>>, vector<8x32xf32>
    %cst_38 = arith.constant dense<0.000000e+00> : vector<8x32xf32>
    %91 = tpu.matmul %89, %90, %cst_38 {dimension_numbers = #tpu.dot_dimension_numbers<[1], [0], [0], [1], [0, 0, 1, 1], [], []>} : vector<8x8xf32>, vector<8x32xf32>, vector<8x32xf32> -> vector<8x32xf32>
    %92 = arith.addf %70, %91 : vector<8x32xf32>
    %93 = vector.extract_strided_slice %37 {offsets = [0, 16], sizes = [8, 8], strides = [1, 1]} : vector<8x32xf32> to vector<8x8xf32>
    %94 = vector.extract_strided_slice %42 {offsets = [0, 16], sizes = [8, 8], strides = [1, 1]} : vector<8x32xf32> to vector<8x8xf32>
    %95 = vector.extract_strided_slice %43 {offsets = [0, 16], sizes = [8, 8], strides = [1, 1]} : vector<8x32xf32> to vector<8x8xf32>
    %cst_39 = arith.constant dense<0.000000e+00> : vector<8x8xf32>
    %96 = tpu.matmul %93, %94, %cst_39 {dimension_numbers = #tpu.dot_dimension_numbers<[1], [1], [0], [0], [0, 0, 1, 0], [], []>} : vector<8x8xf32>, vector<8x8xf32>, vector<8x8xf32> -> vector<8x8xf32>
    %cst_40 = arith.constant -9.99999984E+17 : f32
    %97 = vector.shape_cast %47 : vector<1x8xi1> to vector<1x8xi1>
    %98 = vector.broadcast %97 : vector<1x8xi1> to vector<8x8xi1>
    %99 = vector.broadcast %cst_40 : f32 to vector<8x8xf32>
    %100 = arith.select %98, %99, %96 : vector<8x8xi1>, vector<8x8xf32>
    %cst_41 = arith.constant dense<0xFF800000> : vector<8xf32>
    %101 = vector.multi_reduction <maximumf>, %100, %cst_41 [1] : vector<8x8xf32> to vector<8xf32>
    %102 = vector.shape_cast %101 : vector<8xf32> to vector<8x1xf32>
    %103 = vector.broadcast %102 : vector<8x1xf32> to vector<8x8xf32>
    %104 = arith.subf %100, %103 : vector<8x8xf32>
    %105 = math.exp %104 : vector<8x8xf32>
    %cst_42 = arith.constant dense<0.000000e+00> : vector<8xf32>
    %106 = vector.multi_reduction <add>, %105, %cst_42 [1] : vector<8x8xf32> to vector<8xf32>
    %107 = vector.shape_cast %106 : vector<8xf32> to vector<8x1xf32>
    %cst_43 = arith.constant dense<0.000000e+00> : vector<8x8xf32>
    %108 = tpu.matmul %105, %95, %cst_43 {dimension_numbers = #tpu.dot_dimension_numbers<[1], [0], [0], [1], [0, 0, 1, 1], [], []>} : vector<8x8xf32>, vector<8x8xf32>, vector<8x8xf32> -> vector<8x8xf32>
    %109 = tpu.reciprocal %107 {approx = true} : vector<8x1xf32> -> vector<8x1xf32>
    %110 = vector.broadcast %109 : vector<8x1xf32> to vector<8x8xf32>
    %111 = arith.mulf %108, %110 : vector<8x8xf32>
    %c16 = arith.constant 16 : index
    %c0_44 = arith.constant 0 : index
    %112 = vector.load %arg5[%c16, %c0_44] : memref<32x32xf32, #tpu.memory_space<vmem>>, vector<8x32xf32>
    %cst_45 = arith.constant dense<0.000000e+00> : vector<8x32xf32>
    %113 = tpu.matmul %111, %112, %cst_45 {dimension_numbers = #tpu.dot_dimension_numbers<[1], [0], [0], [1], [0, 0, 1, 1], [], []>} : vector<8x8xf32>, vector<8x32xf32>, vector<8x32xf32> -> vector<8x32xf32>
    %114 = arith.addf %92, %113 : vector<8x32xf32>
    %115 = vector.extract_strided_slice %37 {offsets = [0, 24], sizes = [8, 8], strides = [1, 1]} : vector<8x32xf32> to vector<8x8xf32>
    %116 = vector.extract_strided_slice %42 {offsets = [0, 24], sizes = [8, 8], strides = [1, 1]} : vector<8x32xf32> to vector<8x8xf32>
    %117 = vector.extract_strided_slice %43 {offsets = [0, 24], sizes = [8, 8], strides = [1, 1]} : vector<8x32xf32> to vector<8x8xf32>
    %cst_46 = arith.constant dense<0.000000e+00> : vector<8x8xf32>
    %118 = tpu.matmul %115, %116, %cst_46 {dimension_numbers = #tpu.dot_dimension_numbers<[1], [1], [0], [0], [0, 0, 1, 0], [], []>} : vector<8x8xf32>, vector<8x8xf32>, vector<8x8xf32> -> vector<8x8xf32>
    %cst_47 = arith.constant -9.99999984E+17 : f32
    %119 = vector.shape_cast %47 : vector<1x8xi1> to vector<1x8xi1>
    %120 = vector.broadcast %119 : vector<1x8xi1> to vector<8x8xi1>
    %121 = vector.broadcast %cst_47 : f32 to vector<8x8xf32>
    %122 = arith.select %120, %121, %118 : vector<8x8xi1>, vector<8x8xf32>
    %cst_48 = arith.constant dense<0xFF800000> : vector<8xf32>
    %123 = vector.multi_reduction <maximumf>, %122, %cst_48 [1] : vector<8x8xf32> to vector<8xf32>
    %124 = vector.shape_cast %123 : vector<8xf32> to vector<8x1xf32>
    %125 = vector.broadcast %124 : vector<8x1xf32> to vector<8x8xf32>
    %126 = arith.subf %122, %125 : vector<8x8xf32>
    %127 = math.exp %126 : vector<8x8xf32>
    %cst_49 = arith.constant dense<0.000000e+00> : vector<8xf32>
    %128 = vector.multi_reduction <add>, %127, %cst_49 [1] : vector<8x8xf32> to vector<8xf32>
    %129 = vector.shape_cast %128 : vector<8xf32> to vector<8x1xf32>
    %cst_50 = arith.constant dense<0.000000e+00> : vector<8x8xf32>
    %130 = tpu.matmul %127, %117, %cst_50 {dimension_numbers = #tpu.dot_dimension_numbers<[1], [0], [0], [1], [0, 0, 1, 1], [], []>} : vector<8x8xf32>, vector<8x8xf32>, vector<8x8xf32> -> vector<8x8xf32>
    %131 = tpu.reciprocal %129 {approx = true} : vector<8x1xf32> -> vector<8x1xf32>
    %132 = vector.broadcast %131 : vector<8x1xf32> to vector<8x8xf32>
    %133 = arith.mulf %130, %132 : vector<8x8xf32>
    %c24 = arith.constant 24 : index
    %c0_51 = arith.constant 0 : index
    %134 = vector.load %arg5[%c24, %c0_51] : memref<32x32xf32, #tpu.memory_space<vmem>>, vector<8x32xf32>
    %cst_52 = arith.constant dense<0.000000e+00> : vector<8x32xf32>
    %135 = tpu.matmul %133, %134, %cst_52 {dimension_numbers = #tpu.dot_dimension_numbers<[1], [0], [0], [1], [0, 0, 1, 1], [], []>} : vector<8x8xf32>, vector<8x32xf32>, vector<8x32xf32> -> vector<8x32xf32>
    %136 = arith.addf %114, %135 : vector<8x32xf32>
    %c0_53 = arith.constant 0 : index
    %c0_54 = arith.constant 0 : index
    %137 = vector.load %arg6[%c0_53, %c0_54] : memref<1x32xf32, #tpu.memory_space<vmem>>, vector<1x32xf32>
    %138 = vector.broadcast %137 : vector<1x32xf32> to vector<8x32xf32>
    %139 = arith.addf %136, %138 : vector<8x32xf32>
    %140 = arith.addf %139, %1 : vector<8x32xf32>
    %c0_55 = arith.constant 0 : index
    %c0_56 = arith.constant 0 : index
    %141 = vector.load %arg9[%c0_55, %c0_56] : memref<1x32xf32, #tpu.memory_space<vmem>>, vector<1x32xf32>
    %c0_57 = arith.constant 0 : index
    %c0_58 = arith.constant 0 : index
    %142 = vector.load %arg10[%c0_57, %c0_58] : memref<1x32xf32, #tpu.memory_space<vmem>>, vector<1x32xf32>
    %cst_59 = arith.constant dense<0.000000e+00> : vector<8xf32>
    %143 = vector.multi_reduction <add>, %140, %cst_59 [1] : vector<8x32xf32> to vector<8xf32>
    %144 = vector.shape_cast %143 : vector<8xf32> to vector<8x1xf32>
    %cst_60 = arith.constant 3.200000e+01 : f32
    %145 = vector.broadcast %cst_60 : f32 to vector<8x1xf32>
    %146 = arith.divf %144, %145 : vector<8x1xf32>
    %147 = arith.mulf %140, %140 : vector<8x32xf32>
    %cst_61 = arith.constant dense<0.000000e+00> : vector<8xf32>
    %148 = vector.multi_reduction <add>, %147, %cst_61 [1] : vector<8x32xf32> to vector<8xf32>
    %149 = vector.shape_cast %148 : vector<8xf32> to vector<8x1xf32>
    %cst_62 = arith.constant 3.200000e+01 : f32
    %150 = vector.broadcast %cst_62 : f32 to vector<8x1xf32>
    %151 = arith.divf %149, %150 : vector<8x1xf32>
    %152 = arith.mulf %146, %146 : vector<8x1xf32>
    %153 = arith.subf %151, %152 : vector<8x1xf32>
    %154 = vector.broadcast %146 : vector<8x1xf32> to vector<8x32xf32>
    %155 = arith.subf %140, %154 : vector<8x32xf32>
    %cst_63 = arith.constant 9.99999997E-7 : f32
    %156 = vector.broadcast %cst_63 : f32 to vector<8x1xf32>
    %157 = arith.addf %153, %156 : vector<8x1xf32>
    %158 = math.rsqrt %157 : vector<8x1xf32>
    %159 = vector.broadcast %158 : vector<8x1xf32> to vector<8x32xf32>
    %160 = arith.mulf %155, %159 : vector<8x32xf32>
    %161 = vector.broadcast %141 : vector<1x32xf32> to vector<8x32xf32>
    %162 = arith.mulf %160, %161 : vector<8x32xf32>
    %163 = vector.broadcast %142 : vector<1x32xf32> to vector<8x32xf32>
    %164 = arith.addf %162, %163 : vector<8x32xf32>
    %c0_64 = arith.constant 0 : index
    %c0_65 = arith.constant 0 : index
    %165 = vector.load %arg11[%c0_64, %c0_65] : memref<32x64xf32, #tpu.memory_space<vmem>>, vector<32x64xf32>
    %cst_66 = arith.constant dense<0.000000e+00> : vector<8x64xf32>
    %166 = tpu.matmul %164, %165, %cst_66 {dimension_numbers = #tpu.dot_dimension_numbers<[1], [0], [0], [1], [0, 0, 1, 1], [], []>} : vector<8x32xf32>, vector<32x64xf32>, vector<8x64xf32> -> vector<8x64xf32>
    %c0_67 = arith.constant 0 : index
    %c0_68 = arith.constant 0 : index
    %167 = vector.load %arg12[%c0_67, %c0_68] : memref<1x64xf32, #tpu.memory_space<vmem>>, vector<1x64xf32>
    %168 = vector.broadcast %167 : vector<1x64xf32> to vector<8x64xf32>
    %169 = arith.addf %166, %168 : vector<8x64xf32>
    %cst_69 = arith.constant 0.000000e+00 : f32
    %170 = vector.broadcast %cst_69 : f32 to vector<8x64xf32>
    %171 = arith.maximumf %169, %170 : vector<8x64xf32>
    %c0_70 = arith.constant 0 : index
    %c0_71 = arith.constant 0 : index
    %172 = vector.load %arg13[%c0_70, %c0_71] : memref<64x32xf32, #tpu.memory_space<vmem>>, vector<64x32xf32>
    %cst_72 = arith.constant dense<0.000000e+00> : vector<8x32xf32>
    %173 = tpu.matmul %171, %172, %cst_72 {dimension_numbers = #tpu.dot_dimension_numbers<[1], [0], [0], [1], [0, 0, 1, 1], [], []>} : vector<8x64xf32>, vector<64x32xf32>, vector<8x32xf32> -> vector<8x32xf32>
    %c0_73 = arith.constant 0 : index
    %c0_74 = arith.constant 0 : index
    %174 = vector.load %arg14[%c0_73, %c0_74] : memref<1x32xf32, #tpu.memory_space<vmem>>, vector<1x32xf32>
    %175 = vector.broadcast %174 : vector<1x32xf32> to vector<8x32xf32>
    %176 = arith.addf %173, %175 : vector<8x32xf32>
    %177 = arith.addf %176, %140 : vector<8x32xf32>
    %c0_75 = arith.constant 0 : index
    %c0_76 = arith.constant 0 : index
    %c0_77 = arith.constant 0 : index
    %178 = vector.load %arg17[%c0_75, %c0_76, %c0_77] : memref<1x8x32xf32, #tpu.memory_space<vmem>>, vector<1x8x32xf32>
    %179 = vector.shape_cast %178 : vector<1x8x32xf32> to vector<8x32xf32>
    %180 = vector.shape_cast %177 : vector<8x32xf32> to vector<1x8x32xf32>
    tpu.vector_store %arg17[%c0_75, %c0_76, %c0_77], %180 {strides = array<i32>} : memref<1x8x32xf32, #tpu.memory_space<vmem>>, vector<1x8x32xf32>,
    return
  }
  func.func @transform_0(%arg0: i32) -> (i32, i32, i32) {
    %c0_i32 = arith.constant 0 : i32
    %c0_i32_0 = arith.constant 0 : i32
    %c0_i32_1 = arith.constant 0 : i32
    return %arg0, %c0_i32, %c0_i32_0 : i32, i32, i32
  }
  func.func @transform_1(%arg0: i32) -> (i32, i32, i32) {
    %c0_i32 = arith.constant 0 : i32
    %c0_i32_0 = arith.constant 0 : i32
    %c0_i32_1 = arith.constant 0 : i32
    return %arg0, %c0_i32, %c0_i32_0 : i32, i32, i32
  }
  func.func @transform_2(%arg0: i32) -> (i32, i32) {
    %c0_i32 = arith.constant 0 : i32
    %c0_i32_0 = arith.constant 0 : i32
    %c0_i32_1 = arith.constant 0 : i32
    return %c0_i32, %c0_i32_0 : i32, i32
  }
  func.func @transform_3(%arg0: i32) -> (i32, i32) {
    %c0_i32 = arith.constant 0 : i32
    %c0_i32_0 = arith.constant 0 : i32
    %c0_i32_1 = arith.constant 0 : i32
    return %c0_i32, %c0_i32_0 : i32, i32
  }
  func.func @transform_4(%arg0: i32) -> (i32, i32) {
    %c0_i32 = arith.constant 0 : i32
    %c0_i32_0 = arith.constant 0 : i32
    %c0_i32_1 = arith.constant 0 : i32
    return %c0_i32, %c0_i32_0 : i32, i32
  }
  func.func @transform_5(%arg0: i32) -> (i32, i32) {
    %c0_i32 = arith.constant 0 : i32
    %c0_i32_0 = arith.constant 0 : i32
    %c0_i32_1 = arith.constant 0 : i32
    return %c0_i32, %c0_i32_0 : i32, i32
  }
  func.func @transform_6(%arg0: i32) -> (i32, i32) {
    %c0_i32 = arith.constant 0 : i32
    %c0_i32_0 = arith.constant 0 : i32
    %c0_i32_1 = arith.constant 0 : i32
    return %c0_i32, %c0_i32_0 : i32, i32
  }
  func.func @transform_7(%arg0: i32) -> (i32, i32) {
    %c0_i32 = arith.constant 0 : i32
    %c0_i32_0 = arith.constant 0 : i32
    %c0_i32_1 = arith.constant 0 : i32
    return %c0_i32, %c0_i32_0 : i32, i32
  }
  func.func @transform_8(%arg0: i32) -> (i32, i32) {
    %c0_i32 = arith.constant 0 : i32
    %c0_i32_0 = arith.constant 0 : i32
    %c0_i32_1 = arith.constant 0 : i32
    return %c0_i32, %c0_i32_0 : i32, i32
  }
  func.func @transform_9(%arg0: i32) -> (i32, i32) {
    %c0_i32 = arith.constant 0 : i32
    %c0_i32_0 = arith.constant 0 : i32
    %c0_i32_1 = arith.constant 0 : i32
    return %c0_i32, %c0_i32_0 : i32, i32
  }
  func.func @transform_10(%arg0: i32) -> (i32, i32) {
    %c0_i32 = arith.constant 0 : i32
    %c0_i32_0 = arith.constant 0 : i32
    %c0_i32_1 = arith.constant 0 : i32
    return %c0_i32, %c0_i32_0 : i32, i32
  }
  func.func @transform_11(%arg0: i32) -> (i32, i32) {
    %c0_i32 = arith.constant 0 : i32
    %c0_i32_0 = arith.constant 0 : i32
    %c0_i32_1 = arith.constant 0 : i32
    return %c0_i32, %c0_i32_0 : i32, i32
  }
  func.func @transform_12(%arg0: i32) -> (i32, i32) {
    %c0_i32 = arith.constant 0 : i32
    %c0_i32_0 = arith.constant 0 : i32
    %c0_i32_1 = arith.constant 0 : i32
    return %c0_i32, %c0_i32_0 : i32, i32
  }
  func.func @transform_13(%arg0: i32) -> (i32, i32) {
    %c0_i32 = arith.constant 0 : i32
    %c0_i32_0 = arith.constant 0 : i32
    %c0_i32_1 = arith.constant 0 : i32
    return %c0_i32, %c0_i32_0 : i32, i32
  }
  func.func @transform_14(%arg0: i32) -> (i32, i32) {
    %c0_i32 = arith.constant 0 : i32
    %c0_i32_0 = arith.constant 0 : i32
    %c0_i32_1 = arith.constant 0 : i32
    return %c0_i32, %c0_i32_0 : i32, i32
  }
  func.func @transform_15(%arg0: i32) -> (i32, i32) {
    %c0_i32 = arith.constant 0 : i32
    %c0_i32_0 = arith.constant 0 : i32
    %c0_i32_1 = arith.constant 0 : i32
    return %c0_i32, %c0_i32_0 : i32, i32
  }
  func.func @transform_16(%arg0: i32) -> (i32, i32, i32) {
    %c0_i32 = arith.constant 0 : i32
    %c0_i32_0 = arith.constant 0 : i32
    %c0_i32_1 = arith.constant 0 : i32
    return %arg0, %c0_i32, %c0_i32_0 : i32, i32, i32
  }
}

</mosaic_0001>

<bundles_post_ra>
// kernel: tpu_custom_call.1
= control target key start
LH: loop header
LB: loop body
LE: loop exit
PB: predicated region body
PF: predicated region fallthrough
CT: control target
= control target key end

     0   :  { %s2581_s0 = inlined_call_operand.hbm [shape: f32[2,8,32], index: 0, kind: input, shape index: {}]   ;;  %s2582_s1 = inlined_call_operand.hbm [shape: f32[2,1,8], index: 1, kind: input, shape index: {}]   ;;  %s2583_s2 = inlined_call_operand.vmem [shape: f32[32,160], index: 2, kind: input, shape index: {}]   ;;  %s2584_s3 = inlined_call_operand.hbm [shape: f32[1,160], index: 3, kind: input, shape index: {}]   ;;  %s2585_s4 = inlined_call_operand.vmem [shape: f32[32,32], index: 4, kind: input, shape index: {}]   ;;  %s2586_s5 = inlined_call_operand.vmem [shape: f32[1,32], index: 5, kind: input, shape index: {}]   ;;  %s2587_s6 = inlined_call_operand.hbm [shape: f32[1,32], index: 6, kind: input, shape index: {}]   ;;  %s2588_s7 = inlined_call_operand.hbm [shape: f32[1,32], index: 7, kind: input, shape index: {}]   ;;  %s2589_s8 = inlined_call_operand.hbm [shape: f32[1,32], index: 8, kind: input, shape index: {}]   ;;  %s2590_s9 = inlined_call_operand.hbm [shape: f32[1,32], index: 9, kind: input, shape index: {}]   ;;  %s2591_s10 = inlined_call_operand.hbm [shape: f32[32,64], index: 10, kind: input, shape index: {}]   ;;  %s2592_s11 = inlined_call_operand.hbm [shape: f32[1,64], index: 11, kind: input, shape index: {}]   ;;  %s2593_s12 = inlined_call_operand.vmem [shape: f32[64,32], index: 12, kind: input, shape index: {}]   ;;  %s2594_s13 = inlined_call_operand.vmem [shape: f32[1,32], index: 13, kind: input, shape index: {}]   ;;  %s2595_s14 = inlined_call_operand.vmem [shape: f32[8,32], index: 14, kind: input, shape index: {}]   ;;  %s2596_s15 = inlined_call_operand.hbm [shape: f32[8,32], index: 15, kind: input, shape index: {}]   ;;  %s2597_s16 = inlined_call_operand.hbm [shape: f32[2,8,32], index: 16, kind: output, shape index: {}]  }
   0x1   :  { %2604 = sst [smem:[#allocation31_spill]] %s2581_s0 }
   0x2   :  { %2605 = sst [smem:[#allocation32_spill]] %s2584_s3 }
   0x3   :  { %2606 = sst [smem:[#allocation33_spill]] %s2587_s6 }
   0x4   :  { %2607 = sst [smem:[#allocation34_spill]] %s2588_s7 }
   0x5   :  { %2608 = sst [smem:[#allocation35_spill]] %s2589_s8 }
   0x6   :  { %2609 = sst [smem:[#allocation36_spill]] %s2590_s9 }
   0x7   :  { %2610 = sst [smem:[#allocation37_spill]] %s2591_s10 }
   0x8   :  { %2611 = sst [smem:[#allocation38_spill]] %s2592_s11 }
   0x9   :  { %2612 = sst [smem:[#allocation39_spill]] %s2593_s12 }
   0xa   :  { %2613 = sst [smem:[#allocation40_spill]] %s2594_s13 }
   0xb   :  { %2614 = sst [smem:[#allocation41_spill]] %s2596_s15 }
   0xc   :  { %2615 = sst [smem:[#allocation42_spill]] %s2597_s16 }
   0xd   :  { %21 = vsyncpa [#allocation3], 0 }
   0xe   :  { %23 = vsyncpa [#allocation3 + $0x1], 0 }
   0xf   :  { %24 = vsyncpa [#allocation6], 0 }
  0x10   :  { %26 = vsyncpa [#allocation6 + $0x1], 0 }
  0x11   :  { %27 = vsyncpa [#allocation9], 0 }
  0x12   :  { %28 = vsyncpa [#allocation12], 0 }
  0x13   :  { %29 = vsyncpa [#allocation15], 0 }
  0x14   :  { %30 = vsyncpa [#allocation18], 0 }
  0x15   :  { %31 = vsyncpa [#allocation4], 0 }
  0x16   :  { %33 = vsyncpa [#allocation4 + $0x1], 0  ;;  %s2196_s21 = smov 0   ;;  %s2198_s22 = smov 0  }
  0x17   :  { %s2200_s23 = smov 0   ;;  %s2202_s24 = smov 0  }
  0x18 LB: > { %2616 = sst [smem:[#allocation28_spill]] %s2084_s23  ;;  %s2220_s28 = sadd.s32 4294967295, %s2088_s24   ;;  %s2088_s24 = sphi %s2202_s24, %s2641_s24   ;;  %s2084_s23 = sphi %s2200_s23, %s2643_s23   ;;  %s2080_s22 = sphi %s2198_s22, %s2645_s22   ;;  %s2076_s21 = sphi %s2196_s21, %s2644_s21  }
  0x19   : > { %s2617_s3 = sld [smem:[#allocation32_spill]]  ;;  %p1477_p0 = scmp.ge.s32.totalorder %s2088_s24, 1 }
  0x1a   : > { %p60_p1 = scmp.eq.s32.totalorder %s2220_s28, 0  ;;  %p416_p2 = scmp.lt.s32.totalorder %s2088_s24, 3 }
  0x1b   : > { %s2090_s30 = smov [#allocation7]   ;;  %s2619_s6 = sld [smem:[#allocation33_spill]] }
  0x1c   : > { %p2225_p3 = pnand %p1477_p0, %p416_p2  ;;  %s433_s0 = sshll.u32 %s2090_s30, 4  ;;  %s434_s0 = int_to_ptr.vmem [resolvable:$true] %s433_s0 }
  0x1d   : > { %s2091_s25 = smov [#allocation8]   ;;  %s2621_s8 = sld [smem:[#allocation35_spill]] }
  0x1e   : > { %p1562_p5 = pneg %p2225_p3  ;;  %s451_s26 = sshll.u32 %s2091_s25, 4  ;;  %s452_s26 = int_to_ptr.vmem [resolvable:$true] %s451_s26 }
  0x1f   : > { %s431_s27 = sshll.u32 %s2617_s3, 4  ;;  %s2622_s10 = sld [smem:[#allocation37_spill]]  ;;  %s432_s27 = int_to_ptr.hbm [resolvable:$true] %s431_s27 }
  0x20   : > { %p2237_p6 = pnand %p1562_p5, %p60_p1  ;;  %s2092_s13 = smov [#allocation11]  }
  0x21   : > { %s449_s19 = sshll.u32 %s2619_s6, 4  ;;  %s475_s12 = sshll.u32 %s2092_s13, 4  ;;  %s450_s19 = int_to_ptr.hbm [resolvable:$true] %s449_s19  ;;  %s476_s12 = int_to_ptr.vmem [resolvable:$true] %s475_s12 }
  0x22   : > { %1565 = dma.hbm_to_vmem [thread:$0]  (!%p2237_p6), %s432_s27, 32, %s434_s0, [#allocation6]  }
  0x23   : > { %s473_s16 = sshll.u32 %s2621_s8, 4  ;;  %s2093_s25 = smov [#allocation14]   ;;  %s474_s16 = int_to_ptr.hbm [resolvable:$true] %s473_s16 }
  0x24   : > { %1568 = dma.hbm_to_vmem [thread:$0]  (!%p2237_p6), %s450_s19, 16, %s452_s26, [#allocation9]  }
  0x25   : > { %s496_s6 = sshll.u32 %s2622_s10, 4  ;;  %s498_s3 = sshll.u32 %s2093_s25, 4  ;;  %s497_s6 = int_to_ptr.hbm [resolvable:$true] %s496_s6  ;;  %s499_s3 = int_to_ptr.vmem [resolvable:$true] %s498_s3 }
  0x26   : > { %1574 = dma.hbm_to_vmem [thread:$0]  (!%p2237_p6), %s474_s16, 16, %s476_s12, [#allocation12]  }
  0x27   : > { %s2094_s30 = smov 128   ;;  %s2095_s8 = smov 8  }
  0x28   : > { %1580 = dma.hbm_to_vmem [thread:$0]  (!%p2237_p6), %s497_s6, 512, %s499_s3, [#allocation15], %s2094_s30, %s2094_s30, %s2095_s8  }
  0x29   : > { %s2623_s7 = sld [smem:[#allocation34_spill]]  ;;  %s2096_s26 = smov [#allocation10]  }
  0x2a   : > { %s463_s13 = sshll.u32 %s2096_s26, 4  ;;  %s2624_s9 = sld [smem:[#allocation36_spill]]  ;;  %s464_s13 = int_to_ptr.vmem [resolvable:$true] %s463_s13 }
  0x2b   : > { %s2097_s16 = smov [#allocation13]   ;;  %s2625_s11 = sld [smem:[#allocation38_spill]] }
  0x2c   : > { %s487_s6 = sshll.u32 %s2097_s16, 4  ;;  %s2626_s15 = sld [smem:[#allocation41_spill]]  ;;  %s488_s6 = int_to_ptr.vmem [resolvable:$true] %s487_s6 }
  0x2d   : > { %s1476_s18 = sadd.s32 4294967294, %s2088_s24   ;;  %p53_p8 = scmp.ne.s32.totalorder %s2084_s23, %s2080_s22 }
  0x2e   : > { %p54_p9 = scmp.eq.s32.totalorder %s2088_s24, 0  ;;  %p59_p10 = scmp.ne.s32.totalorder %s2080_s22, %s2076_s21 }
  0x2f   : > { %s461_s19 = sshll.u32 %s2623_s7, 4  ;;  %p403_p13 = scmp.eq.s32.totalorder %s2220_s28, 1  ;;  %s462_s19 = int_to_ptr.hbm [resolvable:$true] %s461_s19 }
  0x30   : > { %s485_s12 = sshll.u32 %s2624_s9, 4  ;;  %p2290_p11 = por %p54_p9, %p53_p8  ;;  %s486_s12 = int_to_ptr.hbm [resolvable:$true] %s485_s12 }
  0x31   : > { %1571 = dma.hbm_to_vmem [thread:$0]  (!%p2237_p6), %s462_s19, 16, %s464_s13, [#allocation9]  }
  0x32   : > { %s511_s3 = sshll.u32 %s2625_s11, 4  ;;  %s532_s0 = sshll.u32 %s2626_s15, 4  ;;  %s512_s3 = int_to_ptr.hbm [resolvable:$true] %s511_s3  ;;  %s533_s0 = int_to_ptr.hbm [resolvable:$true] %s532_s0 }
  0x33   : > { %1577 = dma.hbm_to_vmem [thread:$0]  (!%p2237_p6), %s486_s12, 16, %s488_s6, [#allocation12]  }
  0x34   : > { %s2098_s19 = smov [#allocation16]   ;;  %s2099_s13 = smov [#allocation17]  }
  0x35   : > { %s513_s26 = sshll.u32 %s2098_s19, 4  ;;  %s534_s17 = sshll.u32 %s2099_s13, 4  ;;  %s514_s26 = int_to_ptr.vmem [resolvable:$true] %s513_s26  ;;  %s535_s17 = int_to_ptr.vmem [resolvable:$true] %s534_s17 }
  0x36   : > { %1583 = dma.hbm_to_vmem [thread:$0]  (!%p2237_p6), %s512_s3, 16, %s514_s26, [#allocation15]  }
  0x37   : > { %1586 = dma.hbm_to_vmem [thread:$0]  (!%p2237_p6), %s533_s0, 128, %s535_s17, [#allocation18]  }
  0x38   : > { %s2277_s12 = sadd.s32 1, %s2088_s24   ;;  %s46_s6 = sadd.s32 1, %s2084_s23 }
  0x39   : > { %2627 = sst [smem:[#allocation29_spill]] %s2277_s12  ;;  %s43_s16 = ssub.s32 %s2088_s24, %s2277_s12 }
  0x3a   : > { %p44_p7 = scmp.eq.s32.totalorder %s43_s16, 0  ;;  %p2296_p12 = por %p60_p1, %p59_p10 }
  0x3b   : > { %p409_p0 = scmp.eq.s32.totalorder %s1476_s18, 1  ;;  %p1606_p2 = scmp.lt.s32.totalorder %s2088_s24, 2 }
  0x3c   : > { %s2288_s8 = scalar_select %p44_p7, %s2084_s23, %s46_s6  }
  0x3d   : > { %s2303_s3 = sand.u32 1, %s2084_s23   ;;  %p2305_p5 = por %p403_p13, %p53_p8 }
  0x3e   : > { %2628 = sst [smem:[#allocation30_spill]] %s2288_s8  ;;  %p2309_p6 = por %p409_p0, %p59_p10 }
  0x3f   : > { %s1487_s0 = sshll.u32 %s2303_s3, 3  ;;  %s1488_s19 = sshll.u32 %s2088_s24, 3 }
  0x40   : > { %s2633_s17 = sld [smem:[#allocation31_spill]]  ;;  %s549_s18 = scalar_lea.vmem [#allocation2], %s1487_s0 }
  0x41   : > { %s557_s6 = sshll.u32 %s549_s18, 4  ;;  %p2320_p7 = pnand %p1606_p2, %p2290_p11  ;;  %s558_s6 = int_to_ptr.vmem [resolvable:$true] %s557_s6 }
  0x42   : > { %s564_s10 = sand.u32 1, %s2088_s24   ;;  %s546_s11 = scalar_lea.sflag [#allocation3], %s2303_s3 }
  0x43   : > { %p1942_p9 = pneg %p2320_p7 }
  0x46   : > { %s553_s16 = scalar_lea.hbm %s2633_s17, %s1488_s19  ;;  %s1945_s19 = scalar_lea.hbm %s2633_s17, 16 }
  0x47   : > { %s555_s7 = sshll.u32 %s553_s16, 4  ;;  %s556_s7 = int_to_ptr.hbm [resolvable:$true] %s555_s7 }
  0x48   : > { %s1938_s15 = sshra.s32 %s556_s7, 4  ;;  %s1939_s15 = int_to_ptr.hbm [resolvable:$true] %s1938_s15 }
  0x49   : > { %s1940_s8 = scalar_lea.hbm %s1939_s15, 8  ;;  %p1946_p11 = scmp.lt.s32.totalorder %s1939_s15, %s2633_s17 }
  0x4a   : > { %p1941_p8 = scmp.ne.s32.totalorder %s1939_s15, %s1940_s8  ;;  %p1947_p0 = scmp.lt.s32.totalorder %s1945_s19, %s1940_s8 }
  0x4c   : > { %p1943_p10 = pnand %p1942_p9, %p1941_p8  ;;  %p1948_p2 = por %p1947_p0, %p1946_p11 }
  0x4e   : > { %p1944_p13 = pneg %p1943_p10 }
  0x50   : > { %p1949_p4 = pnand %p1948_p2, %p1944_p13 }
  0x52   : > { %1952 = shalt.err (!%p1949_p4)
}
  0x53   : > { %1590 = dma.hbm_to_vmem [thread:$0]  (!%p2320_p7), %s556_s7, 128, %s558_s6, %s546_s11  }
  0x54   : > { %s570_s23 = scalar_lea.hbm %s2582_s1, %s2088_s24  ;;  %s567_s0 = scalar_lea.vmem [#allocation5], %s2303_s3 }
  0x55   : > { %s574_s25 = sshll.u32 %s567_s0, 4  ;;  %s572_s12 = sshll.u32 %s570_s23, 4  ;;  %s575_s25 = int_to_ptr.vmem [resolvable:$true] %s574_s25  ;;  %s573_s12 = int_to_ptr.hbm [resolvable:$true] %s572_s12 }
  0x56   : > { %s565_s15 = scalar_lea.sflag [#allocation6], %s564_s10  ;;  %s1968_s8 = sshra.s32 %s573_s12, 4  ;;  %s1969_s8 = int_to_ptr.hbm [resolvable:$true] %s1968_s8 }
  0x57   : > { %s1970_s19 = scalar_lea.hbm %s1969_s8, 1  ;;  %s1975_s11 = scalar_lea.hbm %s2582_s1, 2 }
  0x58   : > { %p1971_p4 = scmp.ne.s32.totalorder %s1969_s8, %s1970_s19  ;;  %p1976_p13 = scmp.lt.s32.totalorder %s1969_s8, %s2582_s1 }
  0x59   : > { %p1977_p11 = scmp.lt.s32.totalorder %s1975_s11, %s1970_s19 }
  0x5a   : > { %p1973_p8 = pnand %p1971_p4, %p1942_p9 }
  0x5b   : > { %p1978_p0 = por %p1977_p11, %p1976_p13 }
  0x5c   : > { %p1974_p10 = pneg %p1973_p8 }
  0x5e   : > { %p1979_p2 = pnand %p1978_p0, %p1974_p10 }
  0x60   : > { %1982 = shalt.err (!%p1979_p2)
}
  0x61   : > { %1593 = dma.hbm_to_vmem [thread:$0]  (!%p2320_p7), %s573_s12, 16, %s575_s25, %s565_s15  }
  0x62   : > { %583 = sbr.rel (%p2225_p3) target bundleno = 1971 (0x7b3), region = 84  ;;  %s2358_s10 = sand.u32 (!%p2225_p3), 1, %s2080_s22  }
  0x63   : > { %s1490_s23 = sshll.u32 (!%p2225_p3), %s2358_s10, 3  ;;  %s586_s3 = scalar_lea.sflag (!%p2225_p3), [#allocation3], %s2358_s10 }
  0x64   : > { %s589_s16 = scalar_lea.vmem (!%p2225_p3), [#allocation2], %s1490_s23 }
  0x67   : > { %2043 = dma.done.wait (%p2296_p12), %s586_s3, 128  }
  0x68   : > { %2045 = vsyncadd (%p2296_p12), %s586_s3, 4294967168  ;;  %s595_s9 = sand.u32 1, %s2220_s28   ;;  %s598_s12 = scalar_lea.vmem [#allocation5], %s2358_s10 }
  0x69   : > { %s596_s29 = scalar_lea.sflag [#allocation6], %s595_s9 }
  0x6a   : > { %2047 = dma.done.wait (%p2296_p12), %s596_s29, 16  }
  0x6b   : > { %2049 = vsyncadd (%p2296_p12), %s596_s29, 4294967280 }
  0x6c   : > { %2051 = dma.done.wait (%p60_p1), [#allocation6], 32  }
  0x6d   : > { %2053 = vsyncadd (%p60_p1), [#allocation6], 4294967264 }
  0x6e   : > { %2055 = dma.done.wait (%p60_p1), [#allocation9], 32  }
  0x6f   : > { %2057 = vsyncadd (%p60_p1), [#allocation9], 4294967264 }
  0x70   : > { %2059 = dma.done.wait (%p60_p1), [#allocation12], 32  }
  0x71   : > { %2061 = vsyncadd (%p60_p1), [#allocation12], 4294967264 }
  0x72   : > { %2063 = dma.done.wait (%p60_p1), [#allocation15], 528  }
  0x73   : > { %2065 = vsyncadd (%p60_p1), [#allocation15], 4294966768 }
  0x74   : > { %2067 = dma.done.wait (%p60_p1), [#allocation18], 128  }
  0x75   : > { %2069 = vsyncadd (%p60_p1), [#allocation18], 4294967168  ;;  %vm695_vm0 = vcmask 261120   ;;  %v2394_v0 = vld [vmem:[%s589_s16] sm:$0xff]  ;;  %v2100_v4 = vmov 32.0   ;;  %v741_v10 = vld [vmem:[%s2583_s2 + $0x30] sm:$0xff] }
  0x76   : > { %v696_v1 = vsel %vm695_vm0, %v2394_v0, 0.0  ;;  %v707_v2 = vmul.f32 %v2394_v0, %v2394_v0  ;;  %1676 = vrcp.f32 %v2100_v4  ;;  %v742_v11 = vld [vmem:[%s2583_s2 + $0x38] sm:$0xff]  ;;  %v739_v12 = vld [vmem:[%s2583_s2 + $0x20] sm:$0xff]  ;;  %764 = vmatpush.msra.mxu0 %v741_v10  ;;  %v740_v13 = vld [vmem:[%s2583_s2 + $0x28] sm:$0xff]  ;;  %s2101_s20 = smov 96   ;;  %s2102_s25 = smov 64  }
  0x77   : > { %697 = vadd.xlane.f32.xlu0 %v696_v1  ;;  %784 = vmatpush.msra.mxu1 %v742_v11  ;;  %v737_v15 = vld [vmem:[%s2583_s2 + $0x10] sm:$0xff]  ;;  %v738_v16 = vld [vmem:[%s2583_s2 + $0x18] sm:$0xff]  ;;  %v735_v18 = vld [vmem:[%s2583_s2] sm:$0xff]  ;;  %s2103_s15 = smov 32   ;;  %s2104_s8 = smov 56   ;;  %vm824_vm5 = vcmask 64512  }
  0x78   : > { %v708_v3 = vsel %vm695_vm0, %v707_v2, 0.0  ;;  %765 = vmatpush.msra.mxu0 %v739_v12  ;;  %v736_v19 = vld [vmem:[%s2583_s2 + $0x8] sm:$0xff]  ;;  %v793_v21 = vld [vmem:[#allocation17] sm:$0xff]  ;;  %v1669_v35 = vld [vmem:[#allocation8] ss:$0 sm:$0xff]  ;;  %s2105_s19 = smov 120  }
  0x79   : > { %785 = vmatpush.msra.mxu1 %v740_v13  ;;  %810 = vrot.lane.b32.xlu1 %v793_v21, %s2101_s20  ;;  %v792_v27 = vld [vmem:[%s2595_s14] sm:$0xff]  ;;  %v1670_v38 = vld [vmem:[#allocation10] ss:$0 sm:$0xff]  ;;  %v743_v41 = vld [vmem:[#allocation7] sm:$0x3]  ;;  %s2106_s26 = smov 48  }
  0x7a   : > { %766 = vmatpush.msra.mxu0 %v737_v15  ;;  %v745_v42 = vperm.slane %v743_v41, 0  ;;  %v746_v43 = vperm.slane %v743_v41, 1  ;;  %s2107_s7 = smov 40   ;;  %s2108_s11 = smov 104   ;;  %v819_v62 = vld [vmem:[%s598_s12] sm:$0x1] }
  0x7b   : > { %786 = vmatpush.msra.mxu1 %v738_v16  ;;  %vm820_vm6 = vcmp.gt.f32.partialorder %v819_v62, 0.0  ;;  %v2109_v1 = vmov 0   ;;  %s2110_s12 = smov 112   ;;  %v888_v13 = vld [vmem:[%s2585_s4] sm:$0xff]  ;;  %vm1269_vm11 = vcmask 523264   ;;  %s2639_s6 = sld [smem:[#allocation42_spill]] }
  0x7c   : > { %v1677_v5 = vpop.eup %1676  ;;  %767 = vmatpush.msra.mxu0 %v735_v18  ;;  %v850_v2 = vsel %vm820_vm6, 1, %v2109_v1  ;;  %s691_s3 = scalar_lea.vmem [#allocation19], %s1490_s23 }
  0x7d   : > { %v700_v6 = vmul.f32 32.0, %v1677_v5  ;;  %vm704_vm1 = vweird.f32 %v1677_v5  ;;  %787 = vmatpush.msra.mxu1 %v736_v19  ;;  %s1308_s16 = sshll.u32 %s691_s3, 4  ;;  %s1309_s16 = int_to_ptr.vmem [resolvable:$true] %s1308_s16 }
  0x7f   : > { %709 = vadd.xlane.f32.xlu0 %v708_v3  ;;  %v701_v7 = vsub.f32 1.0, %v700_v6  ;;  %v851_v3 = vperm.slane %v850_v2, 0 }
  0x81   : > { %v702_v8 = vmul.f32 %v1677_v5, %v701_v7  ;;  %806 = vrot.lane.b32.xlu1 %v792_v27, %s2102_s25  ;;  %vm2450_vm7 = vcmp.eq.s32.totalorder %v851_v3, 1  ;;  %s2018_s23 = scalar_lea.hbm %s2639_s6, 16 }
  0x83   : > { %v703_v9 = vadd.f32 %v1677_v5, %v702_v8 }
  0x85   : > { %v2419_v17 = vsel %vm704_vm1, %v1677_v5, %v703_v9 }
  0xea   : > { %v698_v14 = vpop.xlane.xlu0 %697 }
  0xeb   : > { %v706_v20 = vmul.f32 %v2419_v17, %v698_v14  ;;  %v811_v48 = vpop.permute.xlu1 %810 }
  0xed   : > { %v712_v23 = vmul.f32 %v706_v20, %v706_v20  ;;  %v714_v34 = vsub.f32 %v2394_v0, %v706_v20 }
  0xf2   : > { %v710_v22 = vpop.xlane.xlu0 %709 }
  0xf3   : > { %v711_v24 = vmul.f32 %v710_v22, %v2419_v17  ;;  %v807_v50 = vpop.permute.xlu1 %806 }
  0xf5   : > { %v713_v25 = vsub.f32 %v711_v24, %v712_v23 }
  0xf7   : > { %v715_v26 = vadd.f32 1e-06, %v713_v25 }
  0xf9   : > { %1678 = vrsqrt.f32 %v715_v26  ;;  %vm722_vm3 = vweird.f32 %v715_v26 }
  0xff   : > { %v1679_v28 = vpop.eup %1678 }
 0x100   : > { %v717_v29 = vmul.f32 %v1679_v28, %v715_v26  ;;  %vm723_vm2 = vweird.f32 %v1679_v28 }
 0x101   : > { %vm724_vm4 = vmor %vm722_vm3, %vm723_vm2 }
 0x102   : > { %v718_v30 = vmul.f32 %v1679_v28, %v717_v29 }
 0x104   : > { %v719_v31 = vmul.f32 0.5, %v718_v30 }
 0x106   : > { %v720_v32 = vsub.f32 1.5, %v719_v31 }
 0x108   : > { %v721_v33 = vmul.f32 %v1679_v28, %v720_v32 }
 0x10a   : > { %v725_v36 = vsel %vm724_vm4, %v1679_v28, %v721_v33 }
 0x10b   : > { %v726_v37 = vmul.f32 %v725_v36, %v714_v34 }
 0x10d   : > { %v730_v39 = vmul.f32 %v1669_v35, %v726_v37 }
 0x10f   : > { %v734_v40 = vadd.f32 %v1670_v38, %v730_v39 }
 0x111   : > { %1500 = vmatmul.msk.f32.vlgmr.msra.gmra.mxu0 %vm695_vm0, %v734_v40  ;;  %1501 = vmatmul.msk.f32.vlgmr.msra.gmra.mxu1 %vm695_vm0, %v734_v40 }
 0x18e   : > { %v769_v44 = vpop.f32.mrf.mxu0  ;;  %v789_v45 = vpop.f32.mrf.mxu1 }
 0x18f   : > { %v770_v46 = vadd.f32 %v769_v44, %v745_v42  ;;  %v2437_v47 = vadd.f32 %v789_v45, %v746_v43  ;;  %v956_v45 = vld [vmem:[%s2585_s4 + $0x8] sm:$0xff] }
 0x190   : > { %975 = vmatpush.msrb.mxu0 %v956_v45  ;;  %v1674_v45 = vld [vmem:[#allocation16] ss:$0 sm:$0xff] }
 0x191   : > { %881 = vmatpush.msra.mxu3 %v2437_v47  ;;  %v813_v49 = vmul.f32 %v811_v48, %v770_v46  ;;  %v809_v51 = vmul.f32 %v807_v50, %v770_v46  ;;  %v794_v57 = vmul.f32 %v792_v27, %v770_v46 }
 0x193   : > { %815 = vrot.lane.b32.xlu2 %v813_v49, %s2101_s20 }
 0x19b   : > { %796 = vrot.lane.b32.xlu2 %v793_v21, %s2103_s15  ;;  %s1521_s15 = sshll.u32 %s2220_s28, 3  ;;  %s1296_s28 = scalar_lea.sflag [#allocation4], %s2358_s10 }
 0x19c   : > { %s1306_s13 = scalar_lea.hbm %s2639_s6, %s1521_s15 }
 0x19d   : > { %s1310_s9 = sshll.u32 %s1306_s13, 4  ;;  %s1311_s9 = int_to_ptr.hbm [resolvable:$true] %s1310_s9 }
 0x19e   : > { %s2012_s29 = sshra.s32 %s1311_s9, 4  ;;  %s2013_s29 = int_to_ptr.hbm [resolvable:$true] %s2012_s29 }
 0x19f   : > { %p2019_p7 = scmp.lt.s32.totalorder %s2013_s29, %s2639_s6 }
 0x1ed   : > { %v816_v52 = vpop.permute.xlu2 %815 }
 0x1ee   : > { %v818_v53 = vadd.f32 %v816_v52, %v809_v51 }
 0x1f0   : > { %822 = vrot.lane.b32.xlu0 %v818_v53, %s2102_s25 }
 0x1f5   : > { %v797_v54 = vpop.permute.xlu2 %796 }
 0x1f6   : > { %v799_v55 = vmul.f32 %v797_v54, %v770_v46  ;;  %v1160_v46 = vld [vmem:[%s2585_s4 + $0x18] sm:$0xff] }
 0x1f8   : > { %801 = vrot.lane.b32.xlu1 %v799_v55, %s2101_s20  ;;  %s2014_s20 = scalar_lea.hbm %s2013_s29, 8 }
 0x1f9   : > { %p2015_p1 = scmp.ne.s32.totalorder %s2013_s29, %s2014_s20  ;;  %p2020_p9 = scmp.lt.s32.totalorder %s2018_s23, %s2014_s20 }
 0x1fb   : > { %p2016_p3 = pnand %p2015_p1, %p2305_p5  ;;  %p2021_p4 = por %p2020_p9, %p2019_p7 }
 0x1fd   : > { %p2017_p12 = pneg %p2016_p3 }
 0x1ff   : > { %p2022_p8 = pnand %p2021_p4, %p2017_p12 }
 0x200   : > { %891 = vrot.lane.b32.xlu1 %v818_v53, %s2104_s8 }
 0x262   : > { %v823_v56 = vpop.permute.xlu0 %822 }
 0x263   : > { %1502 = vmatpush.xpose.msk.msra.mxu2 %vm824_vm5, %v823_v56 }
 0x26a   : > { %v802_v58 = vpop.permute.xlu1 %801 }
 0x26b   : > { %v804_v59 = vadd.f32 %v802_v58, %v794_v57 }
 0x26d   : > { %889 = vrot.lane.b32.xlu0 %v804_v59, %s2105_s19  ;;  %1503 = vmatmul.msk.f32.vlgmr.msra.gmra.mxu2 %vm824_vm5, %v804_v59 }
 0x272   : > { %v892_v60 = vpop.permute.xlu1 %891 }
 0x273   : > { %1505 = vmatpush.xpose.msk.msrb.mxu3 %vm824_vm5, %v892_v60  ;;  %v1069_v60 = vld [vmem:[%s2585_s4 + $0x10] sm:$0xff] }
 0x274   : > { %1088 = vmatpush.msra.mxu0 %v1069_v60 }
 0x275   : > { %1005 = vrot.lane.b32.xlu0 %v818_v53, %s2106_s26 }
 0x27d   : > { %1096 = vrot.lane.b32.xlu0 %v818_v53, %s2107_s7  ;;  %s2638_s7 = sld [smem:[#allocation40_spill]] }
 0x285   : > { %1094 = vrot.lane.b32.xlu0 %v804_v59, %s2108_s11 }
 0x2df   : > { %v890_v61 = vpop.permute.xlu0 %889 }
 0x2e7   : > { %v1006_v63 = vpop.permute.xlu0 %1005 }
 0x2ef   : > { %v1097_v5 = vpop.permute.xlu0 %1096 }
 0x2f0   : > { %v847_v6 = vpop.f32.mrf.mxu2  ;;  %1514 = vmatpush.xpose.msk.msrb.mxu1 %vm824_vm5, %v1097_v5 }
 0x2f1   : > { %v853_v7 = vsel %vm2450_vm7, -1e+18, %v847_v6  ;;  %v1671_v6 = vld [vmem:[%s2586_s5] ss:$0 sm:$0xff] }
 0x2f2   : > { %v854_v8 = vsel %vm824_vm5, %v853_v7, -inf }
 0x2f3   : > { %855 = vmax.xlane.f32.xlu2 %v854_v8 }
 0x2f7   : > { %v1095_v9 = vpop.permute.xlu0 %1094 }
 0x2f8   : > { %1515 = vmatmul.msk.f32.vlgmr.msrb.gmra.mxu1 %vm824_vm5, %v1095_v9 }
 0x30b   : > { %1003 = vrot.lane.b32.xlu2 %v804_v59, %s2110_s12 }
 0x366   : > { %v856_v10 = vpop.xlane.xlu2 %855 }
 0x367   : > { %v857_v11 = vsub.f32 %v853_v7, %v856_v10 }
 0x369   : > { %v858_v12 = vmul.f32 1.442695, %v857_v11 }
 0x36b   : > { %1680 = vpow2.f32 %v858_v12 }
 0x36e   : > { %v1004_v27 = vpop.permute.xlu2 %1003 }
 0x371   : > { %v1681_v14 = vpop.eup %1680 }
 0x372   : > { %1504 = vmatmul.msk.f32.vlgmr.msra.gmra.mxu3 %vm824_vm5, %v1681_v14  ;;  %v860_v15 = vsel %vm824_vm5, %v1681_v14, 0.0 }
 0x373   : > { %861 = vadd.xlane.f32.xlu1 %v860_v15  ;;  %998 = vmatpush.msra.mxu3 %v888_v13  ;;  %v1228_v15 = vld [vmem:[#allocation14 + $0x18] sm:$0xff] }
 0x375   : > { %v1119_v16 = vpop.f32.mrf.mxu1 }
 0x376   : > { %v1122_v18 = vsel %vm2450_vm7, -1e+18, %v1119_v16  ;;  %v1227_v16 = vld [vmem:[#allocation14 + $0x10] sm:$0xff] }
 0x377   : > { %v1123_v19 = vsel %vm824_vm5, %v1122_v18, -inf }
 0x37a   : > { %1506 = vmatmul.msk.f32.vlgmr.msrb.gmra.mxu3 %vm824_vm5, %v890_v61 }
 0x37b   : > { %1510 = vmatpush.xpose.msk.msrb.mxu3 %vm824_vm5, %v1006_v63  ;;  %1124 = vmax.xlane.f32.xlu1 %v1123_v19  ;;  %v1225_v19 = vld [vmem:[#allocation14] sm:$0xff] }
 0x394   : > { %928 = vrot.lane.b32.xlu1 %v2437_v47, %s2105_s19  ;;  %s2637_s19 = sld [smem:[#allocation39_spill]] }
 0x39c   : > { %1132 = vrot.lane.b32.xlu1 %v2437_v47, %s2108_s11 }
 0x3e6   : > { %v862_v20 = vpop.xlane.xlu1 %861 }
 0x3e7   : > { %1682 = vrcp.f32 %v862_v20  ;;  %v1264_v20 = vld [vmem:[%s2637_s19 + $0x38] sm:$0xff] }
 0x3e8   : > { %1281 = vmatpush.msra.mxu1 %v1264_v20 }
 0x3ed   : > { %v1683_v21 = vpop.eup %1682 }
 0x3ee   : > { %v1125_v25 = vpop.xlane.xlu1 %1124 }
 0x3ef   : > { %v1126_v29 = vsub.f32 %v1122_v18, %v1125_v25  ;;  %v1226_v18 = vld [vmem:[#allocation14 + $0x8] sm:$0xff] }
 0x3f0   : > { %v1262_v25 = vld [vmem:[%s2637_s19 + $0x28] sm:$0xff] }
 0x3f1   : > { %v1127_v30 = vmul.f32 1.442695, %v1126_v29  ;;  %v1260_v29 = vld [vmem:[%s2637_s19 + $0x18] sm:$0xff] }
 0x3f3   : > { %1684 = vpow2.f32 %v1127_v30 }
 0x3f5   : > { %v883_v22 = vpop.f32.mrf.mxu3 }
 0x3f6   : > { %v887_v23 = vmul.f32 %v1683_v21, %v883_v22  ;;  %v1263_v21 = vld [vmem:[%s2637_s19 + $0x30] sm:$0xff] }
 0x3f7   : > { %1282 = vmatpush.msra.mxu1 %v1263_v21 }
 0x3f8   : > { %1509 = vmatmul.msk.f32.vlgmr.msra.gmra.mxu3 %vm824_vm5, %v887_v23 }
 0x3f9   : > { %v1685_v33 = vpop.eup %1684  ;;  %1283 = vmatpush.msra.mxu1 %v1262_v25 }
 0x3fa   : > { %v1129_v44 = vsel %vm824_vm5, %v1685_v33, 0.0 }
 0x3fd   : > { %v914_v24 = vpop.f32.mrf.mxu3 }
 0x3fe   : > { %v917_v26 = vsel %vm2450_vm7, -1e+18, %v914_v24 }
 0x3ff   : > { %v918_v28 = vsel %vm824_vm5, %v917_v26, -inf }
 0x400   : > { %919 = vmax.xlane.f32.xlu0 %v918_v28  ;;  %1511 = vmatmul.msk.f32.vlgmr.msrb.gmra.mxu3 %vm824_vm5, %v1004_v27  ;;  %v1261_v27 = vld [vmem:[%s2637_s19 + $0x20] sm:$0xff] }
 0x401   : > { %1284 = vmatpush.msra.mxu1 %v1261_v27 }
 0x403   : > { %1285 = vmatpush.msra.mxu1 %v1260_v29 }
 0x406   : > { %v929_v31 = vpop.permute.xlu1 %928 }
 0x407   : > { %949 = vmatpush.msrb.mxu2 %v929_v31 }
 0x40e   : > { %v1133_v32 = vpop.permute.xlu1 %1132 }
 0x40f   : > { %1153 = vmatpush.msra.mxu3 %v1133_v32 }
 0x410   : > { %1516 = vmatmul.msk.f32.vlgmr.msra.gmra.mxu3 %vm824_vm5, %v1685_v33 }
 0x414   : > { %1041 = vrot.lane.b32.xlu0 %v2437_v47, %s2110_s12 }
 0x473   : > { %v920_v34 = vpop.xlane.xlu0 %919 }
 0x474   : > { %v921_v35 = vsub.f32 %v917_v26, %v920_v34 }
 0x476   : > { %v922_v36 = vmul.f32 1.442695, %v921_v35 }
 0x478   : > { %1686 = vpow2.f32 %v922_v36  ;;  %v1672_v36 = vld [vmem:[#allocation11] ss:$0 sm:$0xff] }
 0x47b   : > { %v1000_v37 = vpop.f32.mrf.mxu3 }
 0x47e   : > { %v1687_v38 = vpop.eup %1686 }
 0x47f   : > { %1507 = vmatmul.msk.f32.vlgmr.msrb.gmra.mxu2 %vm824_vm5, %v1687_v38  ;;  %v924_v39 = vsel %vm824_vm5, %v1687_v38, 0.0 }
 0x480   : > { %925 = vadd.xlane.f32.xlu1 %v924_v39  ;;  %v1673_v39 = vld [vmem:[#allocation13] ss:$0 sm:$0xff] }
 0x483   : > { %v1028_v40 = vpop.f32.mrf.mxu3 }
 0x484   : > { %v1031_v41 = vsel %vm2450_vm7, -1e+18, %v1028_v40 }
 0x485   : > { %v1032_v42 = vsel %vm824_vm5, %v1031_v41, -inf }
 0x486   : > { %v1042_v43 = vpop.permute.xlu0 %1041  ;;  %1033 = vmax.xlane.f32.xlu2 %v1032_v42  ;;  %v1259_v42 = vld [vmem:[%s2637_s19 + $0x10] sm:$0xff] }
 0x487   : > { %1062 = vmatpush.msra.mxu2 %v1042_v43  ;;  %1286 = vmatpush.msra.mxu1 %v1259_v42  ;;  %v1258_v43 = vld [vmem:[%s2637_s19 + $0x8] sm:$0xff] }
 0x489   : > { %1179 = vmatpush.msrb.mxu2 %v1160_v46  ;;  %1287 = vmatpush.msra.mxu1 %v1258_v43 }
 0x48e   : > { %1130 = vadd.xlane.f32.xlu2 %v1129_v44  ;;  %v1257_v44 = vld [vmem:[%s2637_s19] sm:$0xff] }
 0x48f   : > { %1288 = vmatpush.msra.mxu1 %v1257_v44 }
 0x493   : > { %v1155_v58 = vpop.f32.mrf.mxu3 }
 0x4f3   : > { %v926_v47 = vpop.xlane.xlu1 %925 }
 0x4f4   : > { %1688 = vrcp.f32 %v926_v47 }
 0x4f9   : > { %v1034_v48 = vpop.xlane.xlu2 %1033 }
 0x4fa   : > { %v1035_v49 = vsub.f32 %v1031_v41, %v1034_v48  ;;  %v1689_v52 = vpop.eup %1688 }
 0x4fc   : > { %v1036_v50 = vmul.f32 1.442695, %v1035_v49  ;;  %v1675_v49 = vld [vmem:[%s2638_s7] ss:$0 sm:$0xff] }
 0x4fe   : > { %1690 = vpow2.f32 %v1036_v50 }
 0x501   : > { %v1131_v51 = vpop.xlane.xlu2 %1130 }
 0x502   : > { %1692 = vrcp.f32 %v1131_v51  ;;  %v951_v53 = vpop.f32.mrf.mxu2 }
 0x503   : > { %v955_v54 = vmul.f32 %v1689_v52, %v951_v53 }
 0x504   : > { %v1691_v55 = vpop.eup %1690 }
 0x505   : > { %1508 = vmatmul.msk.f32.vlgmr.msrb.gmra.mxu0 %vm824_vm5, %v955_v54  ;;  %1512 = vmatmul.msk.f32.vlgmr.msra.gmra.mxu2 %vm824_vm5, %v1691_v55  ;;  %v1038_v56 = vsel %vm824_vm5, %v1691_v55, 0.0 }
 0x506   : > { %1039 = vadd.xlane.f32.xlu0 %v1038_v56  ;;  %1248 = vmatpush.msrb.mxu0 %v1228_v15 }
 0x508   : > { %v1693_v57 = vpop.eup %1692  ;;  %1249 = vmatpush.msrb.mxu0 %v1227_v16 }
 0x509   : > { %v1159_v59 = vmul.f32 %v1693_v57, %v1155_v58 }
 0x50a   : > { %1250 = vmatpush.msrb.mxu0 %v1226_v18 }
 0x50c   : > { %1251 = vmatpush.msrb.mxu0 %v1225_v19 }
 0x50d   : > { %1517 = vmatmul.msk.f32.vlgmr.msrb.gmra.mxu2 %vm824_vm5, %v1159_v59 }
 0x579   : > { %v1040_v61 = vpop.xlane.xlu0 %1039 }
 0x57a   : > { %1694 = vrcp.f32 %v1040_v61 }
 0x580   : > { %v1695_v62 = vpop.eup %1694 }
 0x582   : > { %v977_v2 = vpop.f32.mrf.mxu0 }
 0x583   : > { %v1001_v3 = vadd.f32 %v1000_v37, %v977_v2 }
 0x588   : > { %v1064_v63 = vpop.f32.mrf.mxu2 }
 0x589   : > { %v1068_v1 = vmul.f32 %v1695_v62, %v1064_v63 }
 0x58b   : > { %1513 = vmatmul.msk.f32.vlgmr.msra.gmra.mxu0 %vm824_vm5, %v1068_v1 }
 0x590   : > { %v1181_v7 = vpop.f32.mrf.mxu2 }
 0x608   : > { %v1090_v4 = vpop.f32.mrf.mxu0 }
 0x609   : > { %v1093_v5 = vadd.f32 %v1090_v4, %v1001_v3 }
 0x60b   : > { %v1184_v8 = vadd.f32 %v1181_v7, %v1093_v5 }
 0x60d   : > { %v1189_v9 = vadd.f32 %v1671_v6, %v1184_v8 }
 0x60f   : > { %v2506_v10 = vadd.f32 %v1189_v9, %v2394_v0 }
 0x611   : > { %v1193_v11 = vsel %vm695_vm0, %v2506_v10, 0.0  ;;  %v1197_v12 = vmul.f32 %v2506_v10, %v2506_v10 }
 0x612   : > { %1194 = vadd.xlane.f32.xlu2 %v1193_v11 }
 0x613   : > { %v1198_v13 = vsel %vm695_vm0, %v1197_v12, 0.0 }
 0x61a   : > { %1199 = vadd.xlane.f32.xlu2 %v1198_v13 }
 0x685   : > { %v1195_v14 = vpop.xlane.xlu2 %1194 }
 0x686   : > { %v1196_v0 = vmul.f32 %v1195_v14, %v2419_v17 }
 0x688   : > { %v1202_v23 = vmul.f32 %v1196_v0, %v1196_v0  ;;  %v1204_v35 = vsub.f32 %v2506_v10, %v1196_v0 }
 0x68d   : > { %v1200_v22 = vpop.xlane.xlu2 %1199 }
 0x68e   : > { %v1201_v24 = vmul.f32 %v1200_v22, %v2419_v17 }
 0x690   : > { %v1203_v26 = vsub.f32 %v1201_v24, %v1202_v23 }
 0x692   : > { %v1205_v28 = vadd.f32 1e-06, %v1203_v26 }
 0x694   : > { %1696 = vrsqrt.f32 %v1205_v28  ;;  %vm1212_vm9 = vweird.f32 %v1205_v28 }
 0x69a   : > { %v1697_v17 = vpop.eup %1696 }
 0x69b   : > { %v1207_v30 = vmul.f32 %v1697_v17, %v1205_v28  ;;  %vm1213_vm8 = vweird.f32 %v1697_v17 }
 0x69c   : > { %vm1214_vm10 = vmor %vm1212_vm9, %vm1213_vm8 }
 0x69d   : > { %v1208_v31 = vmul.f32 %v1697_v17, %v1207_v30 }
 0x69f   : > { %v1209_v32 = vmul.f32 0.5, %v1208_v31 }
 0x6a1   : > { %v1210_v33 = vsub.f32 1.5, %v1209_v32 }
 0x6a3   : > { %v1211_v34 = vmul.f32 %v1697_v17, %v1210_v33 }
 0x6a5   : > { %v1215_v37 = vsel %vm1214_vm10, %v1697_v17, %v1211_v34 }
 0x6a6   : > { %v1216_v38 = vmul.f32 %v1215_v37, %v1204_v35 }
 0x6a8   : > { %v1220_v40 = vmul.f32 %v1672_v36, %v1216_v38 }
 0x6aa   : > { %v1224_v41 = vadd.f32 %v1673_v39, %v1220_v40 }
 0x6ac   : > { %1518 = vmatmul.msk.f32.vlgmr.msrb.gmra.mxu0 %vm695_vm0, %v1224_v41 }
 0x729   : > { %v1253_v46 = vpop.f32.mrf.mxu0 }
 0x72a   : > { %v1254_v47 = vadd.f32 %v1674_v45, %v1253_v46 }
 0x72c   : > { %v1256_v48 = vmax.f32 %v1254_v47, 0.0 }
 0x72e   : > { %1519 = vmatmul.msk.f32.vlgmr.msra.gmra.mxu1 %vm1269_vm11, %v1256_v48 }
 0x7ab   : > { %v1290_v50 = vpop.f32.mrf.mxu1 }
 0x7ac   : > { %v1291_v51 = vadd.f32 %v1675_v49, %v1290_v50 }
 0x7ae   : > { %v1293_v52 = vadd.f32 %v1291_v51, %v2506_v10 }
 0x7b0   : > { %1294 = vst.msk [vmem:[%s691_s3] sm:$0xff] %vm695_vm0, %v1293_v52 }
 0x7b1   : > { %2025 = shalt.err (!%p2022_p8)
}
 0x7b2   : > { %1560 = dma.vmem_to_hbm [thread:$0]  (%p2305_p5), %s1309_s16, 128, %s1311_s9, %s1296_s28  }
 0x7b3 PF: > { %s1322_s10 = sand.u32 1, %s2076_s21   ;;  %p2640_p10 = scmp.ge.s32.totalorder %s2088_s24, 2 }
 0x7b4   : > { %s1323_s8 = scalar_lea.sflag [#allocation4], %s1322_s10 }
 0x7b5   : > { %p1595_p13 = pnand %p2640_p10, %p2309_p6 }
 0x7b7   : > { %p1596_p11 = pneg %p1595_p13 }
 0x7b9   : > { %2071 = dma.done.wait (%p1596_p11), %s1323_s8, 128  }
 0x7ba   : > { %2073 = vsyncadd (%p1596_p11), %s1323_s8, 4294967168  ;;  %s2641_s24 = sld [smem:[#allocation29_spill]]  ;;  %s2644_s21 = smov %s2080_s22 }
 0x7bb   : > { %s2642_s26 = sld [smem:[#allocation28_spill]] }
 0x7bc   : > { %s2643_s23 = sld [smem:[#allocation30_spill]] }
 0x7c0   : > { %p36_p0 = scmp.ge.s32.totalorder %s2641_s24, 4  }
 0x7c1   : > { %s2645_s22 = smov %s2642_s26 }
 0x7c2   :  { %38 = sbr.rel (!%p36_p0) target bundleno = 24 (0x18), region = 174 }
 0x7c7   :  { %1329 = vsyncpa [#allocation3], 1 }
 0x7c8   :  { %1331 = vsyncpa [#allocation3 + $0x1], 1 }
 0x7c9   :  { %1332 = vsyncpa [#allocation6], 1 }
 0x7ca   :  { %1334 = vsyncpa [#allocation6 + $0x1], 1 }
 0x7cb   :  { %1335 = vsyncpa [#allocation9], 1 }
 0x7cc   :  { %1336 = vsyncpa [#allocation12], 1 }
 0x7cd   :  { %1337 = vsyncpa [#allocation15], 1 }
 0x7ce   :  { %1338 = vsyncpa [#allocation18], 1 }
 0x7cf   :  { %1339 = vsyncpa [#allocation4], 1 }
 0x7d0   :  { %1341 = vsyncpa [#allocation4 + $0x1], 1 }

</bundles_post_ra>
